<compile_context>
chip_gen: v7x
topology: tpu7x:2x2x1
jax: 0.10.0
libtpu: 0.0.40
codegen_flags: <defaults>
</compile_context>

<pallas_src>
import functools

import jax
import jax.numpy as jnp
from jax.experimental import pallas as pl
from jax.experimental.pallas import tpu as pltpu


_SQRT2_INV = 0.7071067811865476


def _gelu_exact(x):
    # PyTorch nn.GELU() default is the exact (erf) formulation.
    return 0.5 * x * (1.0 + jax.lax.erf(x * _SQRT2_INV))


def _neck_kernel(x_ref, w1_ref, scale_ref, shift_ref, w2_ref, b2_ref, out_ref, *, cout):
    # x_ref:     (tm, Cin)        bf16 token tile (channels-last)
    # w1_ref:    (Cin, 4*Cout)    bf16, column block k1 = kh1*2+kw1 holds W1[:, :, kh1, kw1]
    # scale_ref: (1, 4*Cout)      f32 folded BN scale (tiled over the 4 k1 blocks)
    # shift_ref: (1, 4*Cout)      f32 folded BN shift + conv1 bias (tiled over k1)
    # w2_ref:    (Cout, 4*Cout)   bf16, column block k2 = kh2*2+kw2 holds W2[:, :, kh2, kw2]
    # b2_ref:    (1, 4*Cout)      f32 conv2 bias (tiled over k2)
    # out_ref:   (tm, 16*Cout)    f32, column index = k1*4*Cout + k2*Cout + c
    x = x_ref[...]

    # Stage 1: all 4 conv1 kernel positions in one wide MXU matmul.
    h = jnp.dot(x, w1_ref[...], preferred_element_type=jnp.float32)     # (tm, 4*Cout)
    # Inference-mode (Sync)BatchNorm + conv1 bias folded into a single affine, then GELU.
    h = h * scale_ref[...] + shift_ref[...]
    h = _gelu_exact(h)
    hb = h.astype(w2_ref.dtype)

    w2 = w2_ref[...]
    b2 = b2_ref[...]
    # Stage 2: one wide matmul per stage-1 kernel position; lane-dense stores.
    for k1 in range(4):
        hk = hb[:, k1 * cout:(k1 + 1) * cout]                            # (tm, Cout)
        y = jnp.dot(hk, w2, preferred_element_type=jnp.float32) + b2     # (tm, 4*Cout)
        out_ref[:, k1 * 4 * cout:(k1 + 1) * 4 * cout] = y.astype(out_ref.dtype)


def conv_transformer_neck(x_nchw, params, *, tm=256, eps=1e-5, compute_dtype=jnp.bfloat16):
    """Pallas implementation of the shared_neck forward (fpn1, inference mode)."""
    B, Cin, Hp, Wp = x_nchw.shape
    W1_pt, b1 = params["W1"], params["b1"]            # (Cin, Cout, 2, 2), (Cout,)
    W2_pt, b2 = params["W2"], params["b2"]            # (Cout, Cout, 2, 2), (Cout,)
    gamma, beta = params["gamma"], params["beta"]
    mean, var = params["mean"], params["var"]
    Cout = W1_pt.shape[1]

    N = B * Hp * Wp
    tm = max(8, min(int(tm), N))
    tm -= tm % 8                                      # keep sublane-aligned tiles
    n_blocks = pl.cdiv(N, tm)
    N_pad = n_blocks * tm

    # Glue: NCHW -> token-major channels-last; pad ragged token count.
    # TODO(synk): production Cin/Cout should be multiples of 128 for full MXU-lane
    # utilization; the small test dims are left unpadded (channel dims = full block).
    x_tok = jnp.transpose(x_nchw, (0, 2, 3, 1)).reshape(N, Cin)
    if N_pad != N:
        x_tok = jnp.pad(x_tok, ((0, N_pad - N), (0, 0)))
    x_tok = x_tok.astype(compute_dtype)

    # ConvTranspose2d weight (Cin, Cout, 2, 2) -> (Cin, 4*Cout); column block k = kh*2+kw.
    w1 = jnp.transpose(W1_pt, (0, 2, 3, 1)).reshape(Cin, 4 * Cout).astype(compute_dtype)
    w2 = jnp.transpose(W2_pt, (0, 2, 3, 1)).reshape(Cout, 4 * Cout).astype(compute_dtype)

    # Fold BatchNorm (inference, running stats) and conv1 bias: y = (x@W1)*scale + shift.
    scale = gamma / jnp.sqrt(var + eps)
    shift = (b1 - mean) * scale + beta
    scale4 = jnp.tile(scale, 4).reshape(1, 4 * Cout).astype(jnp.float32)
    shift4 = jnp.tile(shift, 4).reshape(1, 4 * Cout).astype(jnp.float32)
    b2_4 = jnp.tile(b2, 4).reshape(1, 4 * Cout).astype(jnp.float32)

    kernel = functools.partial(_neck_kernel, cout=Cout)
    out = pl.pallas_call(
        kernel,
        out_shape=jax.ShapeDtypeStruct((N_pad, 16 * Cout), jnp.float32),
        grid_spec=pltpu.PrefetchScalarGridSpec(
            num_scalar_prefetch=0,
            grid=(n_blocks,),
            in_specs=[
                pl.BlockSpec((tm, Cin), lambda i: (i, 0)),
                pl.BlockSpec((Cin, 4 * Cout), lambda i: (0, 0)),
                pl.BlockSpec((1, 4 * Cout), lambda i: (0, 0)),
                pl.BlockSpec((1, 4 * Cout), lambda i: (0, 0)),
                pl.BlockSpec((Cout, 4 * Cout), lambda i: (0, 0)),
                pl.BlockSpec((1, 4 * Cout), lambda i: (0, 0)),
            ],
            out_specs=pl.BlockSpec((tm, 16 * Cout), lambda i: (i, 0)),
        ),
        compiler_params=pltpu.CompilerParams(
            dimension_semantics=("parallel",),
            vmem_limit_bytes=64 * 1024 * 1024,
        ),
    )(x_tok, w1, scale4, shift4, w2, b2_4)

    out = out[:N]
    # Columns: k1*4*Cout + k2*Cout + c with k1 = (kh1, kw1), k2 = (kh2, kw2).
    # Final row = 4*i + 2*kh1 + kh2 ; final col = 4*j + 2*kw1 + kw2.
    out = out.reshape(B, Hp, Wp, 2, 2, 2, 2, Cout)        # (b, i, j, kh1, kw1, kh2, kw2, c)
    out = jnp.transpose(out, (0, 7, 1, 3, 5, 2, 4, 6))    # (b, c, i, kh1, kh2, j, kw1, kw2)
    # TODO(synk): this NCHW transpose re-moves the 16x-upsampled tensor through HBM;
    # drop it (return channels-last) if the downstream consumer accepts NHWC.
    return out.reshape(B, Cout, 4 * Hp, 4 * Wp)           # NCHW


# ------------------------- pure-JAX reference (for verification) -------------------------

def _convT_2x2_s2_ref(x, W, b):
    # x: (B,Cin,H,W), W: (Cin,Cout,2,2), b: (Cout,)  -- ConvTranspose2d with k=s=2, p=0.
    y = jnp.einsum("bchw,codk->bohdwk", x, W)             # (B,Cout,H,2,W,2)
    Bn, Co, H, _, Wd, _ = y.shape
    return y.reshape(Bn, Co, 2 * H, 2 * Wd) + b[None, :, None, None]


def _reference(x, params, eps=1e-5):
    h = _convT_2x2_s2_ref(x, params["W1"], params["b1"])
    m = params["mean"][None, :, None, None]
    v = params["var"][None, :, None, None]
    g = params["gamma"][None, :, None, None]
    bt = params["beta"][None, :, None, None]
    h = (h - m) / jnp.sqrt(v + eps) * g + bt
    h = _gelu_exact(h)
    return _convT_2x2_s2_ref(h, params["W2"], params["b2"])


if __name__ == "__main__":
    key = jax.random.PRNGKey(0)
    B, embed_dim, out_dim, Hp, Wp = 2, 32, 32, 8, 8

    ks = jax.random.split(key, 9)
    x = jax.random.normal(ks[0], (B, embed_dim, Hp, Wp), jnp.float32)
    params = {
        "W1": jax.random.normal(ks[1], (embed_dim, out_dim, 2, 2), jnp.float32) * 0.1,
        "b1": jax.random.normal(ks[2], (out_dim,), jnp.float32) * 0.1,
        "W2": jax.random.normal(ks[3], (out_dim, out_dim, 2, 2), jnp.float32) * 0.1,
        "b2": jax.random.normal(ks[4], (out_dim,), jnp.float32) * 0.1,
        "gamma": 1.0 + 0.1 * jax.random.normal(ks[5], (out_dim,), jnp.float32),
        "beta": 0.1 * jax.random.normal(ks[6], (out_dim,), jnp.float32),
        "mean": 0.1 * jax.random.normal(ks[7], (out_dim,), jnp.float32),
        "var": 0.5 + jnp.abs(jax.random.normal(ks[8], (out_dim,), jnp.float32)),
    }

    # TODO(synk): SyncBatchNorm is run in folded inference mode (running stats);
    # training-mode cross-device batch-statistics sync is not reproduced.

    out = conv_transformer_neck(x, params)
    out = jax.block_until_ready(out)

    ref = _reference(x, params)
    assert out.shape == (B, out_dim, 4 * Hp, 4 * Wp), out.shape
    # Tolerance reflects bf16 MXU operands (f32 accumulation) vs the f32 reference.
    assert jnp.allclose(out, ref, rtol=5e-2, atol=5e-2), float(jnp.max(jnp.abs(out - ref)))

    print("KERNEL_OK")
</pallas_src>

<mosaic_0001>
module attributes {stable_mosaic.version = 11 : i64} {
  func.func @_neck_kernel(%arg0: i32, %arg1: memref<128x32xbf16, #tpu.memory_space<vmem>>, %arg2: memref<32x128xbf16, #tpu.memory_space<vmem>>, %arg3: memref<1x128xf32, #tpu.memory_space<vmem>>, %arg4: memref<1x128xf32, #tpu.memory_space<vmem>>, %arg5: memref<32x128xbf16, #tpu.memory_space<vmem>>, %arg6: memref<1x128xf32, #tpu.memory_space<vmem>>, %arg7: memref<128x512xf32, #tpu.memory_space<vmem>>) attributes {dimension_semantics = [#tpu.dimension_semantics<parallel>], iteration_bounds = array<i64: 1>, scalar_prefetch = 0 : i64, scratch_operands = 0 : i64, tpu.core_type = #tpu.core_type<tc>, window_params = [{transform_indices = @transform_0, window_bounds = array<i64: 128, 32>}, {pipeline_mode = #tpu.pipeline_mode<synchronous>, transform_indices = @transform_1, window_bounds = array<i64: 32, 128>}, {pipeline_mode = #tpu.pipeline_mode<synchronous>, transform_indices = @transform_2, window_bounds = array<i64: 1, 128>}, {pipeline_mode = #tpu.pipeline_mode<synchronous>, transform_indices = @transform_3, window_bounds = array<i64: 1, 128>}, {pipeline_mode = #tpu.pipeline_mode<synchronous>, transform_indices = @transform_4, window_bounds = array<i64: 32, 128>}, {pipeline_mode = #tpu.pipeline_mode<synchronous>, transform_indices = @transform_5, window_bounds = array<i64: 1, 128>}, {transform_indices = @transform_6, window_bounds = array<i64: 128, 512>}]} {
    %c0 = arith.constant 0 : index
    %c0_0 = arith.constant 0 : index
    %0 = vector.load %arg1[%c0, %c0_0] : memref<128x32xbf16, #tpu.memory_space<vmem>>, vector<128x32xbf16>
    %c0_1 = arith.constant 0 : index
    %c0_2 = arith.constant 0 : index
    %1 = vector.load %arg2[%c0_1, %c0_2] : memref<32x128xbf16, #tpu.memory_space<vmem>>, vector<32x128xbf16>
    %cst = arith.constant dense<0.000000e+00> : vector<128x128xf32>
    %2 = tpu.matmul %0, %1, %cst {dimension_numbers = #tpu.dot_dimension_numbers<[1], [0], [0], [1], [0, 0, 1, 1], [], []>} : vector<128x32xbf16>, vector<32x128xbf16>, vector<128x128xf32> -> vector<128x128xf32>
    %c0_3 = arith.constant 0 : index
    %c0_4 = arith.constant 0 : index
    %3 = vector.load %arg3[%c0_3, %c0_4] : memref<1x128xf32, #tpu.memory_space<vmem>>, vector<1x128xf32>
    %4 = vector.broadcast %3 : vector<1x128xf32> to vector<128x128xf32>
    %5 = arith.mulf %2, %4 : vector<128x128xf32>
    %c0_5 = arith.constant 0 : index
    %c0_6 = arith.constant 0 : index
    %6 = vector.load %arg4[%c0_5, %c0_6] : memref<1x128xf32, #tpu.memory_space<vmem>>, vector<1x128xf32>
    %7 = vector.broadcast %6 : vector<1x128xf32> to vector<128x128xf32>
    %8 = arith.addf %5, %7 : vector<128x128xf32>
    %cst_7 = arith.constant 5.000000e-01 : f32
    %9 = vector.broadcast %cst_7 : f32 to vector<128x128xf32>
    %10 = arith.mulf %9, %8 : vector<128x128xf32>
    %cst_8 = arith.constant 0.707106769 : f32
    %11 = vector.broadcast %cst_8 : f32 to vector<128x128xf32>
    %12 = arith.mulf %8, %11 : vector<128x128xf32>
    %13 = math.erf %12 : vector<128x128xf32>
    %cst_9 = arith.constant 1.000000e+00 : f32
    %14 = vector.broadcast %cst_9 : f32 to vector<128x128xf32>
    %15 = arith.addf %14, %13 : vector<128x128xf32>
    %16 = arith.mulf %10, %15 : vector<128x128xf32>
    %17 = arith.truncf %16 : vector<128x128xf32> to vector<128x128xbf16>
    %c0_10 = arith.constant 0 : index
    %c0_11 = arith.constant 0 : index
    %18 = vector.load %arg5[%c0_10, %c0_11] : memref<32x128xbf16, #tpu.memory_space<vmem>>, vector<32x128xbf16>
    %c0_12 = arith.constant 0 : index
    %c0_13 = arith.constant 0 : index
    %19 = vector.load %arg6[%c0_12, %c0_13] : memref<1x128xf32, #tpu.memory_space<vmem>>, vector<1x128xf32>
    %20 = vector.extract_strided_slice %17 {offsets = [0, 0], sizes = [128, 32], strides = [1, 1]} : vector<128x128xbf16> to vector<128x32xbf16>
    %cst_14 = arith.constant dense<0.000000e+00> : vector<128x128xf32>
    %21 = tpu.matmul %20, %18, %cst_14 {dimension_numbers = #tpu.dot_dimension_numbers<[1], [0], [0], [1], [0, 0, 1, 1], [], []>} : vector<128x32xbf16>, vector<32x128xbf16>, vector<128x128xf32> -> vector<128x128xf32>
    %22 = vector.broadcast %19 : vector<1x128xf32> to vector<128x128xf32>
    %23 = arith.addf %21, %22 : vector<128x128xf32>
    %c0_15 = arith.constant 0 : index
    %c0_16 = arith.constant 0 : index
    %24 = vector.load %arg7[%c0_15, %c0_16] : memref<128x512xf32, #tpu.memory_space<vmem>>, vector<128x128xf32>
    tpu.vector_store %arg7[%c0_15, %c0_16], %23 {strides = array<i32>} : memref<128x512xf32, #tpu.memory_space<vmem>>, vector<128x128xf32>,
    %25 = vector.extract_strided_slice %17 {offsets = [0, 32], sizes = [128, 32], strides = [1, 1]} : vector<128x128xbf16> to vector<128x32xbf16>
    %cst_17 = arith.constant dense<0.000000e+00> : vector<128x128xf32>
    %26 = tpu.matmul %25, %18, %cst_17 {dimension_numbers = #tpu.dot_dimension_numbers<[1], [0], [0], [1], [0, 0, 1, 1], [], []>} : vector<128x32xbf16>, vector<32x128xbf16>, vector<128x128xf32> -> vector<128x128xf32>
    %27 = vector.broadcast %19 : vector<1x128xf32> to vector<128x128xf32>
    %28 = arith.addf %26, %27 : vector<128x128xf32>
    %c0_18 = arith.constant 0 : index
    %c128 = arith.constant 128 : index
    %29 = vector.load %arg7[%c0_18, %c128] : memref<128x512xf32, #tpu.memory_space<vmem>>, vector<128x128xf32>
    tpu.vector_store %arg7[%c0_18, %c128], %28 {strides = array<i32>} : memref<128x512xf32, #tpu.memory_space<vmem>>, vector<128x128xf32>,
    %30 = vector.extract_strided_slice %17 {offsets = [0, 64], sizes = [128, 32], strides = [1, 1]} : vector<128x128xbf16> to vector<128x32xbf16>
    %cst_19 = arith.constant dense<0.000000e+00> : vector<128x128xf32>
    %31 = tpu.matmul %30, %18, %cst_19 {dimension_numbers = #tpu.dot_dimension_numbers<[1], [0], [0], [1], [0, 0, 1, 1], [], []>} : vector<128x32xbf16>, vector<32x128xbf16>, vector<128x128xf32> -> vector<128x128xf32>
    %32 = vector.broadcast %19 : vector<1x128xf32> to vector<128x128xf32>
    %33 = arith.addf %31, %32 : vector<128x128xf32>
    %c0_20 = arith.constant 0 : index
    %c256 = arith.constant 256 : index
    %34 = vector.load %arg7[%c0_20, %c256] : memref<128x512xf32, #tpu.memory_space<vmem>>, vector<128x128xf32>
    tpu.vector_store %arg7[%c0_20, %c256], %33 {strides = array<i32>} : memref<128x512xf32, #tpu.memory_space<vmem>>, vector<128x128xf32>,
    %35 = vector.extract_strided_slice %17 {offsets = [0, 96], sizes = [128, 32], strides = [1, 1]} : vector<128x128xbf16> to vector<128x32xbf16>
    %cst_21 = arith.constant dense<0.000000e+00> : vector<128x128xf32>
    %36 = tpu.matmul %35, %18, %cst_21 {dimension_numbers = #tpu.dot_dimension_numbers<[1], [0], [0], [1], [0, 0, 1, 1], [], []>} : vector<128x32xbf16>, vector<32x128xbf16>, vector<128x128xf32> -> vector<128x128xf32>
    %37 = vector.broadcast %19 : vector<1x128xf32> to vector<128x128xf32>
    %38 = arith.addf %36, %37 : vector<128x128xf32>
    %c0_22 = arith.constant 0 : index
    %c384 = arith.constant 384 : index
    %39 = vector.load %arg7[%c0_22, %c384] : memref<128x512xf32, #tpu.memory_space<vmem>>, vector<128x128xf32>
    tpu.vector_store %arg7[%c0_22, %c384], %38 {strides = array<i32>} : memref<128x512xf32, #tpu.memory_space<vmem>>, vector<128x128xf32>,
    return
  }
  func.func @transform_0(%arg0: i32) -> (i32, i32) {
    %c0_i32 = arith.constant 0 : i32
    %c0_i32_0 = arith.constant 0 : i32
    return %arg0, %c0_i32 : i32, i32
  }
  func.func @transform_1(%arg0: i32) -> (i32, i32) {
    %c0_i32 = arith.constant 0 : i32
    %c0_i32_0 = arith.constant 0 : i32
    %c0_i32_1 = arith.constant 0 : i32
    return %c0_i32, %c0_i32_0 : i32, i32
  }
  func.func @transform_2(%arg0: i32) -> (i32, i32) {
    %c0_i32 = arith.constant 0 : i32
    %c0_i32_0 = arith.constant 0 : i32
    %c0_i32_1 = arith.constant 0 : i32
    return %c0_i32, %c0_i32_0 : i32, i32
  }
  func.func @transform_3(%arg0: i32) -> (i32, i32) {
    %c0_i32 = arith.constant 0 : i32
    %c0_i32_0 = arith.constant 0 : i32
    %c0_i32_1 = arith.constant 0 : i32
    return %c0_i32, %c0_i32_0 : i32, i32
  }
  func.func @transform_4(%arg0: i32) -> (i32, i32) {
    %c0_i32 = arith.constant 0 : i32
    %c0_i32_0 = arith.constant 0 : i32
    %c0_i32_1 = arith.constant 0 : i32
    return %c0_i32, %c0_i32_0 : i32, i32
  }
  func.func @transform_5(%arg0: i32) -> (i32, i32) {
    %c0_i32 = arith.constant 0 : i32
    %c0_i32_0 = arith.constant 0 : i32
    %c0_i32_1 = arith.constant 0 : i32
    return %c0_i32, %c0_i32_0 : i32, i32
  }
  func.func @transform_6(%arg0: i32) -> (i32, i32) {
    %c0_i32 = arith.constant 0 : i32
    %c0_i32_0 = arith.constant 0 : i32
    return %arg0, %c0_i32 : i32, i32
  }
}

</mosaic_0001>

<bundles_post_ra>
// kernel: tpu_custom_call.1
= control target key start
LH: loop header
LB: loop body
LE: loop exit
PB: predicated region body
PF: predicated region fallthrough
CT: control target
= control target key end

     0   :  { %11 = vsyncpa [#allocation3], 0  ;;  %s1880_s0 = inlined_call_operand.hbm [shape: bf16[128,32], index: 0, kind: input, shape index: {}]   ;;  %s1881_s1 = inlined_call_operand.hbm [shape: bf16[32,128], index: 1, kind: input, shape index: {}]   ;;  %s1882_s2 = inlined_call_operand.hbm [shape: f32[1,128], index: 2, kind: input, shape index: {}]   ;;  %s1883_s3 = inlined_call_operand.hbm [shape: f32[1,128], index: 3, kind: input, shape index: {}]   ;;  %s1884_s4 = inlined_call_operand.hbm [shape: bf16[32,128], index: 4, kind: input, shape index: {}]   ;;  %s1885_s5 = inlined_call_operand.hbm [shape: f32[1,128], index: 5, kind: input, shape index: {}]   ;;  %s1886_s6 = inlined_call_operand.hbm [shape: f32[128,512], index: 6, kind: output, shape index: {}]  }
   0x1   :  { %12 = vsyncpa [#allocation6], 0 }
   0x2   :  { %13 = vsyncpa [#allocation9], 0 }
   0x3   :  { %14 = vsyncpa [#allocation12], 0 }
   0x4   :  { %15 = vsyncpa [#allocation4], 0  ;;  %s1505_s21 = smov [#allocation5]   ;;  %s1506_s23 = smov [#allocation8]  }
   0x5   :  { %s33_s22 = sshll.u32 %s1505_s21, 4  ;;  %s56_s24 = sshll.u32 %s1506_s23, 4  ;;  %s34_s22 = int_to_ptr.vmem [resolvable:$true] %s33_s22  ;;  %s1552_s24 = int_to_ptr.vmem [resolvable:$true] %s56_s24 }
   0x6   :  { %s1341_s27 = scalar_lea.hbm %s1881_s1, 256 }
   0x7   :  { %p1342_p0 = scmp.ne.s32.totalorder %s1881_s1, %s1341_s27  ;;  %p1345_p1 = scmp.lt.u32.totalorder %s1341_s27, %s1881_s1 }
   0x9   :  { %p1347_p2 = pnand %p1345_p1, %p1342_p0 }
   0xb   :  { %1350 = shalt.err (!%p1347_p2)
}
   0xc   :  { %s1351_s8 = scalar_lea.vmem %s34_s22, 256  ;;  %p1356_p4 = scmp.lt.s32.totalorder %s34_s22, %s34_s22 }
   0xd   :  { %p1352_p3 = scmp.ne.s32.totalorder %s34_s22, %s1351_s8  ;;  %p1357_p5 = scmp.lt.s32.totalorder %s1351_s8, %s1351_s8 }
   0xf   :  { %p1358_p6 = por %p1357_p5, %p1356_p4 }
  0x11   :  { %p1359_p7 = pnand %p1358_p6, %p1352_p3 }
  0x13   :  { %1362 = shalt.err (!%p1359_p7)
}
  0x14   :  { %s1507_s9 = smov 64   ;;  %s1508_s10 = smov 4  }
  0x15   :  { %39 = dma.hbm_to_vmem [thread:$0]  %s1881_s1, 256, %s34_s22, [#allocation6], %s1507_s9, %s1507_s9, %s1508_s10  }
  0x16   :  { %s1363_s15 = scalar_lea.hbm %s1883_s3, 16 }
  0x17   :  { %p1364_p8 = scmp.ne.s32.totalorder %s1883_s3, %s1363_s15  ;;  %p1367_p9 = scmp.lt.u32.totalorder %s1363_s15, %s1883_s3 }
  0x19   :  { %p1369_p10 = pnand %p1367_p9, %p1364_p8 }
  0x1b   :  { %1372 = shalt.err (!%p1369_p10)
}
  0x1c   :  { %s1373_s20 = scalar_lea.vmem %s1552_s24, 16  ;;  %s1377_s1 = scalar_lea.vmem %s1552_s24, 32 }
  0x1d   :  { %p1374_p11 = scmp.ne.s32.totalorder %s1552_s24, %s1373_s20  ;;  %p1378_p12 = scmp.lt.s32.totalorder %s1552_s24, %s1552_s24 }
  0x1e   :  { %p1379_p13 = scmp.lt.s32.totalorder %s1377_s1, %s1373_s20 }
  0x20   :  { %p1380_p0 = por %p1379_p13, %p1378_p12 }
  0x22   :  { %p1381_p1 = pnand %p1380_p0, %p1374_p11 }
  0x24   :  { %1384 = shalt.err (!%p1381_p1)
}
  0x25   :  { %59 = dma.hbm_to_vmem [thread:$0]  %s1883_s3, 16, %s1552_s24, [#allocation9]  }
  0x26   :  { %s1509_s23 = smov [#allocation2]   ;;  %s1510_s26 = smov [#allocation7]  }
  0x27   :  { %s21_s25 = sshll.u32 %s1509_s23, 4  ;;  %s46_s27 = sshll.u32 %s1510_s26, 4  ;;  %s22_s25 = int_to_ptr.vmem [resolvable:$true] %s21_s25  ;;  %s47_s27 = int_to_ptr.vmem [resolvable:$true] %s46_s27 }
  0x28   :  { %s1385_s30 = scalar_lea.hbm %s1880_s0, 1024 }
  0x29   :  { %p1386_p2 = scmp.ne.s32.totalorder %s1880_s0, %s1385_s30  ;;  %p1389_p3 = scmp.lt.u32.totalorder %s1385_s30, %s1880_s0 }
  0x2b   :  { %p1391_p4 = pnand %p1389_p3, %p1386_p2 }
  0x2d   :  { %1394 = shalt.err (!%p1391_p4)
}
  0x2e   :  { %s1395_s3 = scalar_lea.vmem %s22_s25, 1024  ;;  %p1400_p6 = scmp.lt.s32.totalorder %s22_s25, %s22_s25 }
  0x2f   :  { %p1396_p5 = scmp.ne.s32.totalorder %s22_s25, %s1395_s3  ;;  %p1401_p7 = scmp.lt.s32.totalorder %s1395_s3, %s1395_s3 }
  0x31   :  { %p1402_p8 = por %p1401_p7, %p1400_p6 }
  0x33   :  { %p1403_p9 = pnand %p1402_p8, %p1396_p5 }
  0x35   :  { %1406 = shalt.err (!%p1403_p9)
}
  0x36   :  { %27 = dma.hbm_to_vmem [thread:$0]  %s1880_s0, 1024, %s22_s25, [#allocation3], %s1507_s9, %s1507_s9, %s1508_s10  }
  0x37   :  { %s1407_s16 = scalar_lea.hbm %s1882_s2, 16 }
  0x38   :  { %p1408_p10 = scmp.ne.s32.totalorder %s1882_s2, %s1407_s16  ;;  %p1411_p11 = scmp.lt.u32.totalorder %s1407_s16, %s1882_s2 }
  0x3a   :  { %p1413_p12 = pnand %p1411_p11, %p1408_p10 }
  0x3c   :  { %1416 = shalt.err (!%p1413_p12)
}
  0x3d   :  { %s1417_s1 = scalar_lea.vmem %s47_s27, 16  ;;  %s1421_s21 = scalar_lea.vmem %s47_s27, 32 }
  0x3e   :  { %p1418_p13 = scmp.ne.s32.totalorder %s47_s27, %s1417_s1  ;;  %p1422_p0 = scmp.lt.s32.totalorder %s47_s27, %s47_s27 }
  0x3f   :  { %p1423_p1 = scmp.lt.s32.totalorder %s1421_s21, %s1417_s1 }
  0x41   :  { %p1424_p2 = por %p1423_p1, %p1422_p0 }
  0x43   :  { %p1425_p3 = pnand %p1424_p2, %p1418_p13 }
  0x45   :  { %1428 = shalt.err (!%p1425_p3)
}
  0x46   :  { %49 = dma.hbm_to_vmem [thread:$0]  %s1882_s2, 16, %s47_s27, [#allocation6]  }
  0x47   :  { %s1511_s23 = smov [#allocation10]   ;;  %s1512_s26 = smov [#allocation11]  }
  0x48   :  { %s65_s25 = sshll.u32 %s1511_s23, 4  ;;  %s78_s28 = sshll.u32 %s1512_s26, 4  ;;  %s66_s25 = int_to_ptr.vmem [resolvable:$true] %s65_s25  ;;  %s79_s28 = int_to_ptr.vmem [resolvable:$true] %s78_s28 }
  0x49   :  { %s1429_s7 = scalar_lea.hbm %s1884_s4, 256 }
  0x4a   :  { %p1430_p4 = scmp.ne.s32.totalorder %s1884_s4, %s1429_s7  ;;  %p1433_p5 = scmp.lt.u32.totalorder %s1429_s7, %s1884_s4 }
  0x4c   :  { %p1435_p6 = pnand %p1433_p5, %p1430_p4 }
  0x4e   :  { %1438 = shalt.err (!%p1435_p6)
}
  0x4f   :  { %s1439_s2 = scalar_lea.vmem %s66_s25, 256  ;;  %p1444_p8 = scmp.lt.s32.totalorder %s66_s25, %s66_s25 }
  0x50   :  { %p1440_p7 = scmp.ne.s32.totalorder %s66_s25, %s1439_s2  ;;  %p1445_p9 = scmp.lt.s32.totalorder %s1439_s2, %s1439_s2 }
  0x52   :  { %p1446_p10 = por %p1445_p9, %p1444_p8 }
  0x54   :  { %p1447_p11 = pnand %p1446_p10, %p1440_p7 }
  0x56   :  { %1450 = shalt.err (!%p1447_p11)
}
  0x57   :  { %71 = dma.hbm_to_vmem [thread:$0]  %s1884_s4, 256, %s66_s25, [#allocation9], %s1507_s9, %s1507_s9, %s1508_s10  }
  0x58   :  { %s1451_s15 = scalar_lea.hbm %s1885_s5, 16 }
  0x59   :  { %p1452_p12 = scmp.ne.s32.totalorder %s1885_s5, %s1451_s15  ;;  %p1455_p13 = scmp.lt.u32.totalorder %s1451_s15, %s1885_s5 }
  0x5b   :  { %p1457_p0 = pnand %p1455_p13, %p1452_p12 }
  0x5d   :  { %1460 = shalt.err (!%p1457_p0)
}
  0x5e   :  { %s1461_s20 = scalar_lea.vmem %s79_s28, 16  ;;  %s1465_s1 = scalar_lea.vmem %s79_s28, 32 }
  0x5f   :  { %p1462_p1 = scmp.ne.s32.totalorder %s79_s28, %s1461_s20  ;;  %p1466_p2 = scmp.lt.s32.totalorder %s79_s28, %s79_s28 }
  0x60   :  { %p1467_p3 = scmp.lt.s32.totalorder %s1465_s1, %s1461_s20 }
  0x62   :  { %p1468_p4 = por %p1467_p3, %p1466_p2 }
  0x64   :  { %p1469_p5 = pnand %p1468_p4, %p1462_p1 }
  0x66   :  { %1472 = shalt.err (!%p1469_p5)
}
  0x67   :  { %81 = dma.hbm_to_vmem [thread:$0]  %s1885_s5, 16, %s79_s28, [#allocation12]  }
  0x68   :  { %1495 = dma.done.wait [#allocation3], 1024  }
  0x69   :  { %1496 = vsyncadd [#allocation3], 4294966272 }
  0x6a   :  { %1497 = dma.done.wait [#allocation6], 272  }
  0x6b   :  { %1498 = vsyncadd [#allocation6], 4294967024 }
  0x6c   :  { %1499 = dma.done.wait [#allocation9], 272  }
  0x6d   :  { %1500 = vsyncadd [#allocation9], 4294967024 }
  0x6e   :  { %1501 = dma.done.wait [#allocation12], 16  }
  0x6f   :  { %1502 = vsyncadd [#allocation12], 4294967280  ;;  %v1297_v0 = vld [vmem:[#allocation5] sm:$0xff]   ;;  %v1298_v1 = vld [vmem:[#allocation5 + $0x8] sm:$0xff]   ;;  %vm173_vm0 = vcmask 261120   ;;  %s1513_s5 = smov 96  }
  0x70   :  { %1181 = vmatprep.subr.bf16.mxu0 %v1297_v0  ;;  %1281 = vmatprep.subr.bf16.mxu1 %v1297_v0  ;;  %v1299_v2 = vld [vmem:[#allocation2] sm:$0xff]   ;;  %v1300_v4 = vld [vmem:[#allocation2 + $0x8] sm:$0xff]   ;;  %v1303_v6 = vld [vmem:[#allocation2 + $0x10] sm:$0xff]   ;;  %s1514_s21 = smov 32  }
  0x71   :  { %1182 = vmatpush3.bf16.msra.mxu0 %v1297_v0  ;;  %1283 = vmatpush3.bf16.msra.mxu1 %v1297_v0  ;;  %v1301_v3 = vld [vmem:[#allocation2 + $0x20] sm:$0xff]   ;;  %v1302_v5 = vld [vmem:[#allocation2 + $0x28] sm:$0xff]   ;;  %v1305_v7 = vld [vmem:[#allocation2 + $0x30] sm:$0xff]  }
  0x72   :  { %1183 = vmatprep.subr.bf16.mxu0 %v1298_v1  ;;  %1282 = vmatprep.subr.bf16.mxu1 %v1298_v1  ;;  %v1304_v8 = vld [vmem:[#allocation2 + $0x18] sm:$0xff]   ;;  %v1663_v12 = vld [vmem:[#allocation7] ss:$0 sm:$0xff]  ;;  %v1665_v14 = vld [vmem:[#allocation8] ss:$0 sm:$0xff] }
  0x73   :  { %1185 = vmatprep.mubr.msk.bf16.mxu0 %vm173_vm0, %v1299_v2  ;;  %1193 = vmatprep.mubr.msk.bf16.mxu1 %vm173_vm0, %v1301_v3  ;;  %v1306_v9 = vld [vmem:[#allocation2 + $0x38] sm:$0xff]  }
  0x74   :  { %v1649_v10 = vld [vmem:[#allocation10] sm:$0xff]   ;;  %v1655_v11 = vld [vmem:[#allocation10 + $0x8] sm:$0xff]  }
  0x75   :  { %1184 = vmatpush3.bf16.msra.mxu0 %v1298_v1  ;;  %1284 = vmatpush3.bf16.msra.mxu1 %v1298_v1 }
  0x76   :  { %1201 = vmatprep.subr.bf16.mxu1 %v1649_v10  ;;  %1221 = vmatprep.subr.bf16.mxu0 %v1649_v10 }
  0x78   :  { %1186 = vmatmul.mubr.msk.bf16.vlgmr.msra.gmra.mrb[0].mxu0 %vm173_vm0, %v1300_v4  ;;  %1194 = vmatmul.mubr.msk.bf16.vlgmr.msra.gmra.mrb[0].mxu1 %vm173_vm0, %v1302_v5 }
  0x79   :  { %1189 = vmatprep.mubr.msk.bf16.mxu0 %vm173_vm0, %v1303_v6  ;;  %1197 = vmatprep.mubr.msk.bf16.mxu1 %vm173_vm0, %v1305_v7 }
  0x7a   :  { %1202 = vmatpush3.bf16.msra.mxu1 %v1649_v10  ;;  %1222 = vmatpush3.bf16.msra.mxu0 %v1649_v10 }
  0x7b   :  { %1203 = vmatprep.subr.bf16.mxu1 %v1655_v11  ;;  %1223 = vmatprep.subr.bf16.mxu0 %v1655_v11 }
  0x7e   :  { %1204 = vmatpush3.bf16.msra.mxu1 %v1655_v11  ;;  %1224 = vmatpush3.bf16.msra.mxu0 %v1655_v11 }
  0x7f   :  { %1241 = vmatprep.subr.bf16.mxu1 %v1649_v10  ;;  %1261 = vmatprep.subr.bf16.mxu0 %v1649_v10 }
  0x80   :  { %1190 = vmatmul.mubr.msk.bf16.gmra.mrb[4].mxu0 %vm173_vm0, %v1304_v8  ;;  %1198 = vmatmul.mubr.msk.bf16.gmra.mrb[4].mxu1 %vm173_vm0, %v1306_v9 }
 0x14b   :  { %v1187_v13 = vpop.f32.mrb[0].mxu0  ;;  %v1195_v15 = vpop.f32.mrb[0].mxu1 }
 0x14c   :  { %v304_v16 = vmul.f32 %v1187_v13, %v1663_v12  ;;  %v232_v17 = vpop.f32.mrb[1].mxu0  ;;  %v312_v18 = vmul.f32 %v1195_v15, %v1663_v12  ;;  %v264_v19 = vpop.f32.mrb[1].mxu1 }
 0x14d   :  { %v302_v20 = vmul.f32 %v1663_v12, %v232_v17  ;;  %v1188_v21 = vpop.f32.mrb[2].mxu0  ;;  %v310_v22 = vmul.f32 %v1663_v12, %v264_v19  ;;  %v1196_v23 = vpop.f32.mrb[2].mxu1 }
 0x14e   :  { %v327_v24 = vadd.f32 %v1665_v14, %v304_v16  ;;  %v305_v25 = vmul.f32 %v1188_v21, %v1663_v12  ;;  %v235_v26 = vpop.f32.mrb[3].mxu0  ;;  %v335_v27 = vadd.f32 %v1665_v14, %v312_v18  ;;  %v267_v28 = vpop.f32.mrb[3].mxu1  ;;  %v313_v34 = vmul.f32 %v1196_v23, %v1663_v12 }
 0x14f   :  { %v325_v29 = vadd.f32 %v1665_v14, %v302_v20  ;;  %v303_v30 = vmul.f32 %v1663_v12, %v235_v26  ;;  %v333_v31 = vadd.f32 %v1665_v14, %v310_v22  ;;  %v311_v35 = vmul.f32 %v1663_v12, %v267_v28 }
 0x150   :  { %v359_v32 = vmul.f32 0.70710677, %v327_v24  ;;  %v328_v33 = vadd.f32 %v1665_v14, %v305_v25  ;;  %v367_v39 = vmul.f32 0.70710677, %v335_v27  ;;  %v336_v43 = vadd.f32 %v1665_v14, %v313_v34 }
 0x151   :  { %v357_v36 = vmul.f32 0.70710677, %v325_v29  ;;  %v326_v37 = vadd.f32 %v1665_v14, %v303_v30  ;;  %v365_v41 = vmul.f32 0.70710677, %v333_v31  ;;  %v334_v44 = vadd.f32 %v1665_v14, %v311_v35 }
 0x152   :  { %1309 = verf.f32 %v359_v32  ;;  %v360_v38 = vmul.f32 0.70710677, %v328_v33  ;;  %v368_v52 = vmul.f32 0.70710677, %v336_v43  ;;  %v343_v62 = vmul.f32 0.5, %v327_v24 }
 0x153   :  { %1311 = verf.f32 %v357_v36  ;;  %v358_v40 = vmul.f32 0.70710677, %v326_v37  ;;  %v1191_v42 = vpop.f32.mrb[4].mxu0  ;;  %v1199_v47 = vpop.f32.mrb[4].mxu1  ;;  %v366_v55 = vmul.f32 0.70710677, %v334_v44 }
 0x154   :  { %1313 = verf.f32 %v360_v38  ;;  %v308_v45 = vmul.f32 %v1191_v42, %v1663_v12  ;;  %v248_v46 = vpop.f32.mrb[5].mxu0  ;;  %v316_v50 = vmul.f32 %v1199_v47, %v1663_v12  ;;  %v280_v51 = vpop.f32.mrb[5].mxu1  ;;  %v351_v63 = vmul.f32 0.5, %v335_v27 }
 0x155   :  { %1315 = verf.f32 %v358_v40  ;;  %v306_v48 = vmul.f32 %v1663_v12, %v248_v46  ;;  %v1192_v49 = vpop.f32.mrb[6].mxu0  ;;  %v1200_v54 = vpop.f32.mrb[6].mxu1  ;;  %v341_v1 = vmul.f32 0.5, %v325_v29  ;;  %v314_v6 = vmul.f32 %v1663_v12, %v280_v51 }
 0x156   :  { %1317 = verf.f32 %v367_v39  ;;  %v251_v53 = vpop.f32.mrb[7].mxu0  ;;  %v1687_v56 = vadd.f32 %v1665_v14, %v308_v45  ;;  %v283_v58 = vpop.f32.mrb[7].mxu1  ;;  %v309_v59 = vmul.f32 %v1192_v49, %v1663_v12  ;;  %v1695_v61 = vadd.f32 %v1665_v14, %v316_v50 }
 0x157   :  { %1319 = verf.f32 %v365_v41  ;;  %v1690_v57 = vadd.f32 %v1665_v14, %v306_v48  ;;  %v307_v60 = vmul.f32 %v1663_v12, %v251_v53  ;;  %v317_v7 = vmul.f32 %v1200_v54, %v1663_v12 }
 0x158   :  { %1321 = verf.f32 %v368_v52  ;;  %v363_v0 = vmul.f32 0.70710677, %v1687_v56  ;;  %v1700_v3 = vadd.f32 %v1665_v14, %v309_v59  ;;  %v371_v5 = vmul.f32 0.70710677, %v1695_v61 }
 0x159   :  { %1323 = verf.f32 %v366_v55  ;;  %v361_v2 = vmul.f32 0.70710677, %v1690_v57  ;;  %v1703_v4 = vadd.f32 %v1665_v14, %v307_v60  ;;  %v344_v9 = vmul.f32 0.5, %v328_v33 }
 0x15a   :  { %1325 = verf.f32 %v363_v0  ;;  %v349_v13 = vmul.f32 0.5, %v333_v31  ;;  %v364_v15 = vmul.f32 0.70710677, %v1700_v3  ;;  %v1711_v19 = vadd.f32 %v1665_v14, %v314_v6 }
 0x15b   :  { %1327 = verf.f32 %v361_v2  ;;  %v362_v18 = vmul.f32 0.70710677, %v1703_v4  ;;  %v1714_v22 = vadd.f32 %v1665_v14, %v317_v7  ;;  %v315_v23 = vmul.f32 %v1663_v12, %v283_v58 }
 0x15c   :  { %v1310_v8 = vpop.eup %1309  ;;  %1329 = verf.f32 %v371_v5  ;;  %v342_v26 = vmul.f32 0.5, %v326_v37  ;;  %v352_v27 = vmul.f32 0.5, %v336_v43  ;;  %v350_v31 = vmul.f32 0.5, %v334_v44 }
 0x15d   :  { %v1312_v16 = vpop.eup %1311  ;;  %v391_v17 = vadd.f32 1.0, %v1310_v8  ;;  %1331 = verf.f32 %v364_v15  ;;  %v369_v32 = vmul.f32 0.70710677, %v1711_v19  ;;  %v372_v36 = vmul.f32 0.70710677, %v1714_v22 }
 0x15e   :  { %v1314_v20 = vpop.eup %1313  ;;  %v389_v21 = vadd.f32 1.0, %v1312_v16  ;;  %1333 = verf.f32 %v362_v18  ;;  %v338_v38 = vadd.f32 %v1665_v14, %v315_v23  ;;  %v348_v0 = vmul.f32 0.5, %v1700_v3 }
 0x15f   :  { %v1316_v24 = vpop.eup %1315  ;;  %v392_v25 = vadd.f32 1.0, %v1314_v20  ;;  %v407_v29 = vmul.f32 %v391_v17, %v343_v62  ;;  %1335 = verf.f32 %v369_v32  ;;  %v347_v62 = vmul.f32 0.5, %v1687_v56 }
 0x160   :  { %v1318_v28 = vpop.eup %1317  ;;  %v390_v30 = vadd.f32 1.0, %v1316_v24  ;;  %v405_v12 = vmul.f32 %v389_v21, %v341_v1  ;;  %1337 = verf.f32 %v372_v36  ;;  %v370_v47 = vmul.f32 0.70710677, %v338_v38 }
 0x161   :  { %v1320_v33 = vpop.eup %1319  ;;  %v408_v34 = vmul.f32 %v392_v25, %v344_v9  ;;  %v399_v35 = vadd.f32 1.0, %v1318_v28  ;;  %v346_v2 = vmul.f32 0.5, %v1703_v4  ;;  %v355_v6 = vmul.f32 0.5, %v1695_v61 }
 0x162   :  { %v1322_v39 = vpop.eup %1321  ;;  %v406_v40 = vmul.f32 %v390_v30, %v342_v26  ;;  %v397_v41 = vadd.f32 1.0, %v1320_v33  ;;  %1339 = verf.f32 %v370_v47  ;;  %v356_v3 = vmul.f32 0.5, %v1714_v22 }
 0x163   :  { %v1324_v37 = vpop.eup %1323  ;;  %v1720_v42 = vpack.c.bf16 %v408_v34, %v407_v29  ;;  %v415_v43 = vmul.f32 %v399_v35, %v351_v63  ;;  %v400_v45 = vadd.f32 1.0, %v1322_v39  ;;  %v345_v63 = vmul.f32 0.5, %v1690_v57 }
 0x164   :  { %v413_v44 = vmul.f32 %v397_v41, %v349_v13  ;;  %v398_v46 = vadd.f32 1.0, %v1324_v37  ;;  %v1326_v48 = vpop.eup %1325  ;;  %v421_v50 = vpack.c.bf16 %v406_v40, %v405_v12  ;;  %v353_v16 = vmul.f32 0.5, %v1711_v19 }
 0x165   :  { %v416_v49 = vmul.f32 %v400_v45, %v352_v27  ;;  %v1328_v51 = vpop.eup %1327  ;;  %v395_v53 = vadd.f32 1.0, %v1326_v48  ;;  %v354_v21 = vmul.f32 0.5, %v338_v38 }
 0x166   :  { %v414_v52 = vmul.f32 %v398_v46, %v350_v31  ;;  %v1330_v14 = vpop.eup %1329  ;;  %597 = vrot.lane.b32.xlu0 %v421_v50, %s1513_s5  ;;  %1205 = vmatprep.mubr.msk.bf16.mxu1 %vm173_vm0, %v421_v50  ;;  %v393_v58 = vadd.f32 1.0, %v1328_v51 }
 0x167   :  { %v1724_v54 = vpack.c.bf16 %v416_v49, %v415_v43  ;;  %v1332_v55 = vpop.eup %1331  ;;  %1206 = vmatmul.mubr.msk.bf16.vlgmr.msra.gmra.mrb[8].mxu1 %vm173_vm0, %v1720_v42  ;;  %v403_v7 = vadd.f32 1.0, %v1330_v14  ;;  %v411_v8 = vmul.f32 %v395_v53, %v347_v62  ;;  %v1801_v49 = vld [vmem:[#allocation11] ss:$0 sm:$0xff] }
 0x168   :  { %v425_v59 = vpack.c.bf16 %v414_v52, %v413_v44  ;;  %v1334_v60 = vpop.eup %1333  ;;  %v396_v1 = vadd.f32 1.0, %v1332_v55  ;;  %1242 = vmatpush3.bf16.msra.mxu1 %v1649_v10  ;;  %v409_v57 = vmul.f32 %v393_v58, %v345_v63 }
 0x169   :  { %v394_v5 = vadd.f32 1.0, %v1334_v60  ;;  %1243 = vmatprep.subr.bf16.mxu1 %v1655_v11  ;;  %v1336_v56 = vpop.eup %1335  ;;  %v419_v61 = vmul.f32 %v403_v7, %v355_v6 }
 0x16a   :  { %v412_v9 = vmul.f32 %v396_v1, %v348_v0  ;;  %599 = vrot.lane.b32.xlu0 %v1720_v42, %s1513_s5  ;;  %v1338_v15 = vpop.eup %1337  ;;  %v401_v4 = vadd.f32 1.0, %v1336_v56 }
 0x16b   :  { %v410_v13 = vmul.f32 %v394_v5, %v346_v2  ;;  %v404_v18 = vadd.f32 1.0, %v1338_v15 }
 0x16c   :  { %v424_v17 = vpack.c.bf16 %v412_v9, %v411_v8  ;;  %1244 = vmatpush3.bf16.msra.mxu1 %v1655_v11  ;;  %v1340_v23 = vpop.eup %1339  ;;  %v417_v22 = vmul.f32 %v401_v4, %v353_v16 }
 0x16d   :  { %v423_v20 = vpack.c.bf16 %v410_v13, %v409_v57  ;;  %v420_v24 = vmul.f32 %v404_v18, %v356_v3  ;;  %v402_v25 = vadd.f32 1.0, %v1340_v23 }
 0x16e   :  { %605 = vrot.lane.b32.xlu0 %v425_v59, %s1513_s5 }
 0x16f   :  { %601 = vrot.lane.b32.xlu1 %v423_v20, %s1513_s5  ;;  %1209 = vmatprep.mubr.msk.bf16.mxu1 %vm173_vm0, %v423_v20  ;;  %v428_v19 = vpack.c.bf16 %v420_v24, %v419_v61  ;;  %v418_v26 = vmul.f32 %v402_v25, %v354_v21 }
 0x170   :  { %1210 = vmatmul.mubr.msk.bf16.gmra.mrb[12].mxu1 %vm173_vm0, %v424_v17 }
 0x171   :  { %1213 = vmatprep.mubr.msk.bf16.mxu1 %vm173_vm0, %v425_v59  ;;  %v427_v27 = vpack.c.bf16 %v418_v26, %v417_v22 }
 0x173   :  { %603 = vrot.lane.b32.xlu1 %v424_v17, %s1513_s5  ;;  %609 = vrot.lane.b32.xlu0 %v427_v27, %s1513_s5 }
 0x177   :  { %607 = vrot.lane.b32.xlu1 %v1724_v54, %s1513_s5  ;;  %750 = vrot.lane.b32.xlu0 %v421_v50, %s1507_s9 }
 0x178   :  { %1214 = vmatmul.mubr.msk.bf16.gmra.mrb[16].mxu1 %vm173_vm0, %v1724_v54 }
 0x179   :  { %1217 = vmatprep.mubr.msk.bf16.mxu1 %vm173_vm0, %v427_v27 }
 0x17b   :  { %611 = vrot.lane.b32.xlu1 %v428_v19, %s1513_s5  ;;  %752 = vrot.lane.b32.xlu0 %v1720_v42, %s1507_s9 }
 0x17f   :  { %903 = vrot.lane.b32.xlu1 %v421_v50, %s1514_s21  ;;  %754 = vrot.lane.b32.xlu0 %v423_v20, %s1507_s9 }
 0x180   :  { %1218 = vmatmul.mubr.msk.bf16.gmra.mrb[20].mxu1 %vm173_vm0, %v428_v19 }
 0x183   :  { %905 = vrot.lane.b32.xlu1 %v1720_v42, %s1514_s21  ;;  %756 = vrot.lane.b32.xlu0 %v424_v17, %s1507_s9 }
 0x187   :  { %907 = vrot.lane.b32.xlu1 %v423_v20, %s1514_s21  ;;  %758 = vrot.lane.b32.xlu0 %v425_v59, %s1507_s9 }
 0x18b   :  { %909 = vrot.lane.b32.xlu1 %v424_v17, %s1514_s21  ;;  %760 = vrot.lane.b32.xlu0 %v1724_v54, %s1507_s9 }
 0x18f   :  { %911 = vrot.lane.b32.xlu1 %v425_v59, %s1514_s21  ;;  %762 = vrot.lane.b32.xlu0 %v427_v27, %s1507_s9 }
 0x193   :  { %913 = vrot.lane.b32.xlu1 %v1724_v54, %s1514_s21  ;;  %764 = vrot.lane.b32.xlu0 %v428_v19, %s1507_s9  ;;  %s1515_s9 = smov [#allocation13]  }
 0x194   :  { %s1061_s0 = sshll.u32 %s1515_s9, 4  ;;  %s1062_s0 = int_to_ptr.vmem [resolvable:$true] %s1061_s0 }
 0x195   :  { %s1473_s22 = scalar_lea.vmem %s1062_s0, 8192  ;;  %p1478_p7 = scmp.lt.s32.totalorder %s1062_s0, %s1062_s0 }
 0x196   :  { %p1474_p6 = scmp.ne.s32.totalorder %s1062_s0, %s1473_s22  ;;  %p1479_p8 = scmp.lt.s32.totalorder %s1473_s22, %s1473_s22 }
 0x197   :  { %915 = vrot.lane.b32.xlu1 %v427_v27, %s1514_s21 }
 0x198   :  { %p1480_p9 = por %p1479_p8, %p1478_p7 }
 0x19a   :  { %p1481_p10 = pnand %p1480_p9, %p1474_p6 }
 0x19b   :  { %917 = vrot.lane.b32.xlu1 %v428_v19, %s1514_s21 }
 0x1d8   :  { %v598_v28 = vpop.permute.xlu0 %597 }
 0x1d9   :  { %1225 = vmatprep.mubr.msk.bf16.mxu0 %vm173_vm0, %v598_v28 }
 0x1dc   :  { %v600_v29 = vpop.permute.xlu0 %599 }
 0x1dd   :  { %1226 = vmatmul.mubr.msk.bf16.vlgmr.msra.gmra.mrb[8].mxu0 %vm173_vm0, %v600_v29 }
 0x1de   :  { %1262 = vmatpush3.bf16.msra.mxu0 %v1649_v10 }
 0x1df   :  { %1263 = vmatprep.subr.bf16.mxu0 %v1655_v11 }
 0x1e0   :  { %v606_v31 = vpop.permute.xlu0 %605 }
 0x1e1   :  { %v602_v30 = vpop.permute.xlu1 %601 }
 0x1e2   :  { %1229 = vmatprep.mubr.msk.bf16.mxu0 %vm173_vm0, %v602_v30  ;;  %1264 = vmatpush3.bf16.msra.mxu0 %v1655_v11 }
 0x1e5   :  { %v604_v32 = vpop.permute.xlu1 %603  ;;  %v610_v33 = vpop.permute.xlu0 %609 }
 0x1e6   :  { %1230 = vmatmul.mubr.msk.bf16.gmra.mrb[12].mxu0 %vm173_vm0, %v604_v32 }
 0x1e7   :  { %1233 = vmatprep.mubr.msk.bf16.mxu0 %vm173_vm0, %v606_v31 }
 0x1e9   :  { %v608_v34 = vpop.permute.xlu1 %607  ;;  %v751_v35 = vpop.permute.xlu0 %750 }
 0x1ea   :  { %1245 = vmatprep.mubr.msk.bf16.mxu1 %vm173_vm0, %v751_v35 }
 0x1ed   :  { %v612_v36 = vpop.permute.xlu1 %611  ;;  %v753_v10 = vpop.permute.xlu0 %752 }
 0x1ee   :  { %1234 = vmatmul.mubr.msk.bf16.gmra.mrb[16].mxu0 %vm173_vm0, %v608_v34  ;;  %1246 = vmatmul.mubr.msk.bf16.vlgmr.msra.gmra.mrb[24].mxu1 %vm173_vm0, %v753_v10 }
 0x1ef   :  { %1237 = vmatprep.mubr.msk.bf16.mxu0 %vm173_vm0, %v610_v33 }
 0x1f1   :  { %v904_v38 = vpop.permute.xlu1 %903  ;;  %v755_v11 = vpop.permute.xlu0 %754 }
 0x1f2   :  { %1249 = vmatprep.mubr.msk.bf16.mxu1 %vm173_vm0, %v755_v11 }
 0x1f5   :  { %v906_v39 = vpop.permute.xlu1 %905  ;;  %v757_v12 = vpop.permute.xlu0 %756 }
 0x1f6   :  { %1238 = vmatmul.mubr.msk.bf16.gmra.mrb[20].mxu0 %vm173_vm0, %v612_v36  ;;  %1250 = vmatmul.mubr.msk.bf16.gmra.mrb[28].mxu1 %vm173_vm0, %v757_v12 }
 0x1f7   :  { %1265 = vmatprep.mubr.msk.bf16.mxu0 %vm173_vm0, %v904_v38 }
 0x1f9   :  { %v908_v40 = vpop.permute.xlu1 %907  ;;  %v759_v41 = vpop.permute.xlu0 %758 }
 0x1fa   :  { %1253 = vmatprep.mubr.msk.bf16.mxu1 %vm173_vm0, %v759_v41 }
 0x1fd   :  { %v910_v37 = vpop.permute.xlu1 %909  ;;  %v761_v42 = vpop.permute.xlu0 %760 }
 0x1fe   :  { %1266 = vmatmul.mubr.msk.bf16.vlgmr.msra.gmra.mrb[24].mxu0 %vm173_vm0, %v906_v39  ;;  %1254 = vmatmul.mubr.msk.bf16.gmra.mrb[32].mxu1 %vm173_vm0, %v761_v42 }
 0x1ff   :  { %1269 = vmatprep.mubr.msk.bf16.mxu0 %vm173_vm0, %v908_v40 }
 0x201   :  { %v912_v43 = vpop.permute.xlu1 %911  ;;  %v763_v45 = vpop.permute.xlu0 %762 }
 0x202   :  { %1257 = vmatprep.mubr.msk.bf16.mxu1 %vm173_vm0, %v763_v45 }
 0x205   :  { %v765_v44 = vpop.permute.xlu0 %764  ;;  %v914_v46 = vpop.permute.xlu1 %913 }
 0x206   :  { %1270 = vmatmul.mubr.msk.bf16.gmra.mrb[28].mxu0 %vm173_vm0, %v910_v37  ;;  %1258 = vmatmul.mubr.msk.bf16.gmra.mrb[36].mxu1 %vm173_vm0, %v765_v44 }
 0x207   :  { %1273 = vmatprep.mubr.msk.bf16.mxu0 %vm173_vm0, %v912_v43 }
 0x209   :  { %v916_v47 = vpop.permute.xlu1 %915 }
 0x20d   :  { %v918_v48 = vpop.permute.xlu1 %917 }
 0x20e   :  { %1274 = vmatmul.mubr.msk.bf16.gmra.mrb[32].mxu0 %vm173_vm0, %v914_v46 }
 0x20f   :  { %1277 = vmatprep.mubr.msk.bf16.mxu0 %vm173_vm0, %v916_v47 }
 0x216   :  { %1278 = vmatmul.mubr.msk.bf16.gmra.mrb[36].mxu0 %vm173_vm0, %v918_v48 }
 0x23a   :  { %v1207_v50 = vpop.f32.mrb[8].mxu1 }
 0x23b   :  { %v519_v51 = vadd.f32 %v1207_v50, %v1801_v49  ;;  %v510_v52 = vpop.f32.mrb[9].mxu1 }
 0x23c   :  { %v511_v14 = vadd.f32 %v1801_v49, %v510_v52  ;;  %v1208_v53 = vpop.f32.mrb[10].mxu1 }
 0x23d   :  { %575 = vst [vmem:[#allocation13 + $0x40] sm:$0xff] %v519_v51  ;;  %v522_v54 = vadd.f32 %v1208_v53, %v1801_v49  ;;  %v513_v55 = vpop.f32.mrb[11].mxu1 }
 0x23e   :  { %573 = vst [vmem:[#allocation13] sm:$0xff] %v511_v14  ;;  %v514_v58 = vadd.f32 %v1801_v49, %v513_v55 }
 0x23f   :  { %576 = vst [vmem:[#allocation13 + $0x60] sm:$0xff] %v522_v54 }
 0x240   :  { %574 = vst [vmem:[#allocation13 + $0x20] sm:$0xff] %v514_v58 }
 0x243   :  { %v1211_v59 = vpop.f32.mrb[12].mxu1 }
 0x244   :  { %v535_v60 = vadd.f32 %v1211_v59, %v1801_v49  ;;  %v526_v62 = vpop.f32.mrb[13].mxu1 }
 0x245   :  { %v527_v63 = vadd.f32 %v1801_v49, %v526_v62  ;;  %v1212_v0 = vpop.f32.mrb[14].mxu1 }
 0x246   :  { %579 = vst [vmem:[#allocation13 + $0xc0] sm:$0xff] %v535_v60  ;;  %v538_v1 = vadd.f32 %v1212_v0, %v1801_v49  ;;  %v529_v2 = vpop.f32.mrb[15].mxu1 }
 0x247   :  { %577 = vst [vmem:[#allocation13 + $0x80] sm:$0xff] %v527_v63  ;;  %v530_v5 = vadd.f32 %v1801_v49, %v529_v2 }
 0x248   :  { %580 = vst [vmem:[#allocation13 + $0xe0] sm:$0xff] %v538_v1 }
 0x249   :  { %578 = vst [vmem:[#allocation13 + $0xa0] sm:$0xff] %v530_v5 }
 0x24b   :  { %v1215_v6 = vpop.f32.mrb[16].mxu1 }
 0x24c   :  { %v551_v7 = vadd.f32 %v1215_v6, %v1801_v49  ;;  %v542_v8 = vpop.f32.mrb[17].mxu1 }
 0x24d   :  { %v543_v9 = vadd.f32 %v1801_v49, %v542_v8  ;;  %v1216_v56 = vpop.f32.mrb[18].mxu1 }
 0x24e   :  { %583 = vst [vmem:[#allocation13 + $0x140] sm:$0xff] %v551_v7  ;;  %v554_v57 = vadd.f32 %v1216_v56, %v1801_v49  ;;  %v545_v13 = vpop.f32.mrb[19].mxu1 }
 0x24f   :  { %581 = vst [vmem:[#allocation13 + $0x100] sm:$0xff] %v543_v9  ;;  %v546_v3 = vadd.f32 %v1801_v49, %v545_v13 }
 0x250   :  { %584 = vst [vmem:[#allocation13 + $0x160] sm:$0xff] %v554_v57 }
 0x251   :  { %582 = vst [vmem:[#allocation13 + $0x120] sm:$0xff] %v546_v3 }
 0x253   :  { %v1219_v15 = vpop.f32.mrb[20].mxu1 }
 0x254   :  { %v567_v16 = vadd.f32 %v1219_v15, %v1801_v49  ;;  %v558_v4 = vpop.f32.mrb[21].mxu1 }
 0x255   :  { %v559_v17 = vadd.f32 %v1801_v49, %v558_v4  ;;  %v1220_v61 = vpop.f32.mrb[22].mxu1 }
 0x256   :  { %587 = vst [vmem:[#allocation13 + $0x1c0] sm:$0xff] %v567_v16  ;;  %v570_v18 = vadd.f32 %v1220_v61, %v1801_v49  ;;  %v561_v20 = vpop.f32.mrb[23].mxu1 }
 0x257   :  { %585 = vst [vmem:[#allocation13 + $0x180] sm:$0xff] %v559_v17  ;;  %v562_v21 = vadd.f32 %v1801_v49, %v561_v20 }
 0x258   :  { %588 = vst [vmem:[#allocation13 + $0x1e0] sm:$0xff] %v570_v18 }
 0x259   :  { %586 = vst [vmem:[#allocation13 + $0x1a0] sm:$0xff] %v562_v21 }
 0x2b0   :  { %v1227_v23 = vpop.f32.mrb[8].mxu0 }
 0x2b1   :  { %v680_v24 = vadd.f32 %v1227_v23, %v1801_v49  ;;  %v671_v22 = vpop.f32.mrb[9].mxu0 }
 0x2b2   :  { %v672_v25 = vadd.f32 %v1801_v49, %v671_v22  ;;  %v1228_v19 = vpop.f32.mrb[10].mxu0 }
 0x2b3   :  { %736 = vst [vmem:[#allocation13 + $0x48] sm:$0xff] %v680_v24  ;;  %v683_v26 = vadd.f32 %v1228_v19, %v1801_v49  ;;  %v674_v27 = vpop.f32.mrb[11].mxu0 }
 0x2b4   :  { %734 = vst [vmem:[#allocation13 + $0x8] sm:$0xff] %v672_v25  ;;  %v675_v28 = vadd.f32 %v1801_v49, %v674_v27 }
 0x2b5   :  { %737 = vst [vmem:[#allocation13 + $0x68] sm:$0xff] %v683_v26 }
 0x2b6   :  { %735 = vst [vmem:[#allocation13 + $0x28] sm:$0xff] %v675_v28 }
 0x2b9   :  { %v1231_v29 = vpop.f32.mrb[12].mxu0 }
 0x2ba   :  { %v696_v30 = vadd.f32 %v1231_v29, %v1801_v49  ;;  %v687_v31 = vpop.f32.mrb[13].mxu0 }
 0x2bb   :  { %v688_v32 = vadd.f32 %v1801_v49, %v687_v31  ;;  %v1232_v33 = vpop.f32.mrb[14].mxu0 }
 0x2bc   :  { %740 = vst [vmem:[#allocation13 + $0xc8] sm:$0xff] %v696_v30  ;;  %v699_v34 = vadd.f32 %v1232_v33, %v1801_v49  ;;  %v690_v35 = vpop.f32.mrb[15].mxu0 }
 0x2bd   :  { %738 = vst [vmem:[#allocation13 + $0x88] sm:$0xff] %v688_v32  ;;  %v691_v36 = vadd.f32 %v1801_v49, %v690_v35 }
 0x2be   :  { %741 = vst [vmem:[#allocation13 + $0xe8] sm:$0xff] %v699_v34 }
 0x2bf   :  { %739 = vst [vmem:[#allocation13 + $0xa8] sm:$0xff] %v691_v36 }
 0x2c1   :  { %v1235_v10 = vpop.f32.mrb[16].mxu0  ;;  %v1247_v40 = vpop.f32.mrb[24].mxu1 }
 0x2c2   :  { %v712_v38 = vadd.f32 %v1235_v10, %v1801_v49  ;;  %v703_v11 = vpop.f32.mrb[17].mxu0  ;;  %v833_v42 = vadd.f32 %v1247_v40, %v1801_v49  ;;  %v824_v43 = vpop.f32.mrb[25].mxu1 }
 0x2c3   :  { %v704_v39 = vadd.f32 %v1801_v49, %v703_v11  ;;  %v1236_v12 = vpop.f32.mrb[18].mxu0  ;;  %v825_v44 = vadd.f32 %v1801_v49, %v824_v43  ;;  %v1248_v46 = vpop.f32.mrb[26].mxu1 }
 0x2c4   :  { %744 = vst [vmem:[#allocation13 + $0x148] sm:$0xff] %v712_v38  ;;  %v715_v41 = vadd.f32 %v1236_v12, %v1801_v49  ;;  %v706_v37 = vpop.f32.mrb[19].mxu0  ;;  %889 = vst [vmem:[#allocation13 + $0x50] sm:$0xff] %v833_v42  ;;  %v836_v47 = vadd.f32 %v1248_v46, %v1801_v49  ;;  %v827_v48 = vpop.f32.mrb[27].mxu1 }
 0x2c5   :  { %742 = vst [vmem:[#allocation13 + $0x108] sm:$0xff] %v704_v39  ;;  %v707_v45 = vadd.f32 %v1801_v49, %v706_v37  ;;  %887 = vst [vmem:[#allocation13 + $0x10] sm:$0xff] %v825_v44  ;;  %v828_v50 = vadd.f32 %v1801_v49, %v827_v48 }
 0x2c6   :  { %745 = vst [vmem:[#allocation13 + $0x168] sm:$0xff] %v715_v41  ;;  %890 = vst [vmem:[#allocation13 + $0x70] sm:$0xff] %v836_v47 }
 0x2c7   :  { %743 = vst [vmem:[#allocation13 + $0x128] sm:$0xff] %v707_v45  ;;  %888 = vst [vmem:[#allocation13 + $0x30] sm:$0xff] %v828_v50 }
 0x2c9   :  { %v1239_v51 = vpop.f32.mrb[20].mxu0  ;;  %v1251_v55 = vpop.f32.mrb[28].mxu1 }
 0x2ca   :  { %v728_v52 = vadd.f32 %v1239_v51, %v1801_v49  ;;  %v719_v14 = vpop.f32.mrb[21].mxu0  ;;  %v849_v60 = vadd.f32 %v1251_v55, %v1801_v49  ;;  %v840_v62 = vpop.f32.mrb[29].mxu1 }
 0x2cb   :  { %v720_v53 = vadd.f32 %v1801_v49, %v719_v14  ;;  %v1240_v54 = vpop.f32.mrb[22].mxu0  ;;  %v841_v0 = vadd.f32 %v1801_v49, %v840_v62  ;;  %v1252_v1 = vpop.f32.mrb[30].mxu1 }
 0x2cc   :  { %748 = vst [vmem:[#allocation13 + $0x1c8] sm:$0xff] %v728_v52  ;;  %v731_v58 = vadd.f32 %v1240_v54, %v1801_v49  ;;  %v722_v59 = vpop.f32.mrb[23].mxu0  ;;  %893 = vst [vmem:[#allocation13 + $0xd0] sm:$0xff] %v849_v60  ;;  %v852_v2 = vadd.f32 %v1252_v1, %v1801_v49  ;;  %v843_v5 = vpop.f32.mrb[31].mxu1 }
 0x2cd   :  { %746 = vst [vmem:[#allocation13 + $0x188] sm:$0xff] %v720_v53  ;;  %v723_v63 = vadd.f32 %v1801_v49, %v722_v59  ;;  %891 = vst [vmem:[#allocation13 + $0x90] sm:$0xff] %v841_v0  ;;  %v844_v6 = vadd.f32 %v1801_v49, %v843_v5 }
 0x2ce   :  { %749 = vst [vmem:[#allocation13 + $0x1e8] sm:$0xff] %v731_v58  ;;  %894 = vst [vmem:[#allocation13 + $0xf0] sm:$0xff] %v852_v2 }
 0x2cf   :  { %747 = vst [vmem:[#allocation13 + $0x1a8] sm:$0xff] %v723_v63  ;;  %892 = vst [vmem:[#allocation13 + $0xb0] sm:$0xff] %v844_v6 }
 0x2d1   :  { %v1267_v7 = vpop.f32.mrb[24].mxu0  ;;  %v1255_v13 = vpop.f32.mrb[32].mxu1 }
 0x2d2   :  { %v986_v8 = vadd.f32 %v1267_v7, %v1801_v49  ;;  %v977_v9 = vpop.f32.mrb[25].mxu0  ;;  %v865_v16 = vadd.f32 %v1255_v13, %v1801_v49  ;;  %v856_v4 = vpop.f32.mrb[33].mxu1 }
 0x2d3   :  { %v978_v56 = vadd.f32 %v1801_v49, %v977_v9  ;;  %v1268_v57 = vpop.f32.mrb[26].mxu0  ;;  %v857_v61 = vadd.f32 %v1801_v49, %v856_v4  ;;  %v1256_v18 = vpop.f32.mrb[34].mxu1 }
 0x2d4   :  { %1042 = vst [vmem:[#allocation13 + $0x58] sm:$0xff] %v986_v8  ;;  %v989_v3 = vadd.f32 %v1268_v57, %v1801_v49  ;;  %v980_v15 = vpop.f32.mrb[27].mxu0  ;;  %897 = vst [vmem:[#allocation13 + $0x150] sm:$0xff] %v865_v16  ;;  %v868_v20 = vadd.f32 %v1256_v18, %v1801_v49  ;;  %v859_v21 = vpop.f32.mrb[35].mxu1 }
 0x2d5   :  { %1040 = vst [vmem:[#allocation13 + $0x18] sm:$0xff] %v978_v56  ;;  %v981_v17 = vadd.f32 %v1801_v49, %v980_v15  ;;  %895 = vst [vmem:[#allocation13 + $0x110] sm:$0xff] %v857_v61  ;;  %v860_v23 = vadd.f32 %v1801_v49, %v859_v21 }
 0x2d6   :  { %1043 = vst [vmem:[#allocation13 + $0x78] sm:$0xff] %v989_v3  ;;  %898 = vst [vmem:[#allocation13 + $0x170] sm:$0xff] %v868_v20 }
 0x2d7   :  { %1041 = vst [vmem:[#allocation13 + $0x38] sm:$0xff] %v981_v17  ;;  %896 = vst [vmem:[#allocation13 + $0x130] sm:$0xff] %v860_v23 }
 0x2d9   :  { %v1271_v24 = vpop.f32.mrb[28].mxu0  ;;  %v1259_v27 = vpop.f32.mrb[36].mxu1 }
 0x2da   :  { %v1002_v22 = vadd.f32 %v1271_v24, %v1801_v49  ;;  %v993_v25 = vpop.f32.mrb[29].mxu0  ;;  %v881_v30 = vadd.f32 %v1259_v27, %v1801_v49  ;;  %v872_v31 = vpop.f32.mrb[37].mxu1 }
 0x2db   :  { %v994_v19 = vadd.f32 %v1801_v49, %v993_v25  ;;  %v1272_v26 = vpop.f32.mrb[30].mxu0  ;;  %v873_v33 = vadd.f32 %v1801_v49, %v872_v31  ;;  %v1260_v34 = vpop.f32.mrb[38].mxu1 }
 0x2dc   :  { %1046 = vst [vmem:[#allocation13 + $0xd8] sm:$0xff] %v1002_v22  ;;  %v1005_v28 = vadd.f32 %v1272_v26, %v1801_v49  ;;  %v996_v29 = vpop.f32.mrb[31].mxu0  ;;  %901 = vst [vmem:[#allocation13 + $0x1d0] sm:$0xff] %v881_v30  ;;  %v884_v35 = vadd.f32 %v1260_v34, %v1801_v49  ;;  %v875_v36 = vpop.f32.mrb[39].mxu1 }
 0x2dd   :  { %1044 = vst [vmem:[#allocation13 + $0x98] sm:$0xff] %v994_v19  ;;  %v997_v32 = vadd.f32 %v1801_v49, %v996_v29  ;;  %899 = vst [vmem:[#allocation13 + $0x190] sm:$0xff] %v873_v33  ;;  %v876_v10 = vadd.f32 %v1801_v49, %v875_v36 }
 0x2de   :  { %1047 = vst [vmem:[#allocation13 + $0xf8] sm:$0xff] %v1005_v28  ;;  %902 = vst [vmem:[#allocation13 + $0x1f0] sm:$0xff] %v884_v35 }
 0x2df   :  { %1045 = vst [vmem:[#allocation13 + $0xb8] sm:$0xff] %v997_v32  ;;  %900 = vst [vmem:[#allocation13 + $0x1b0] sm:$0xff] %v876_v10 }
 0x2e1   :  { %v1275_v38 = vpop.f32.mrb[32].mxu0 }
 0x2e2   :  { %v1018_v11 = vadd.f32 %v1275_v38, %v1801_v49  ;;  %v1009_v39 = vpop.f32.mrb[33].mxu0 }
 0x2e3   :  { %v1010_v12 = vadd.f32 %v1801_v49, %v1009_v39  ;;  %v1276_v40 = vpop.f32.mrb[34].mxu0 }
 0x2e4   :  { %1050 = vst [vmem:[#allocation13 + $0x158] sm:$0xff] %v1018_v11  ;;  %v1021_v41 = vadd.f32 %v1276_v40, %v1801_v49  ;;  %v1012_v37 = vpop.f32.mrb[35].mxu0 }
 0x2e5   :  { %1048 = vst [vmem:[#allocation13 + $0x118] sm:$0xff] %v1010_v12  ;;  %v1013_v42 = vadd.f32 %v1801_v49, %v1012_v37 }
 0x2e6   :  { %1051 = vst [vmem:[#allocation13 + $0x178] sm:$0xff] %v1021_v41 }
 0x2e7   :  { %1049 = vst [vmem:[#allocation13 + $0x138] sm:$0xff] %v1013_v42 }
 0x2e9   :  { %v1279_v43 = vpop.f32.mrb[36].mxu0 }
 0x2ea   :  { %v1034_v45 = vadd.f32 %v1279_v43, %v1801_v49  ;;  %v1025_v44 = vpop.f32.mrb[37].mxu0 }
 0x2eb   :  { %v1026_v46 = vadd.f32 %v1801_v49, %v1025_v44  ;;  %v1280_v47 = vpop.f32.mrb[38].mxu0 }
 0x2ec   :  { %1054 = vst [vmem:[#allocation13 + $0x1d8] sm:$0xff] %v1034_v45  ;;  %v1037_v48 = vadd.f32 %v1280_v47, %v1801_v49  ;;  %v1028_v50 = vpop.f32.mrb[39].mxu0 }
 0x2ed   :  { %1052 = vst [vmem:[#allocation13 + $0x198] sm:$0xff] %v1026_v46  ;;  %v1029_v51 = vadd.f32 %v1801_v49, %v1028_v50 }
 0x2ee   :  { %1055 = vst [vmem:[#allocation13 + $0x1f8] sm:$0xff] %v1037_v48 }
 0x2ef   :  { %1053 = vst [vmem:[#allocation13 + $0x1b8] sm:$0xff] %v1029_v51 }
 0x2f0   :  { %1484 = shalt.err (!%p1481_p10)
}
 0x2f1   :  { %s1485_s26 = scalar_lea.hbm %s1886_s6, 8192 }
 0x2f2   :  { %p1486_p11 = scmp.ne.s32.totalorder %s1886_s6, %s1485_s26  ;;  %p1489_p12 = scmp.lt.u32.totalorder %s1485_s26, %s1886_s6 }
 0x2f4   :  { %p1491_p13 = pnand %p1489_p12, %p1486_p11 }
 0x2f6   :  { %1494 = shalt.err (!%p1491_p13)
}
 0x2f7   :  { %s1516_s8 = smov 512  }
 0x2f8   :  { %1067 = dma.vmem_to_hbm [thread:$0]  %s1062_s0, 8192, %s1886_s6, [#allocation4], %s1516_s8, %s1516_s8, %s1514_s21  }
 0x2f9   :  { %1503 = dma.done.wait [#allocation4], 8192  }
 0x2fa   :  { %1504 = vsyncadd [#allocation4], 4294959104 }
 0x2fb   :  { %1071 = vsyncpa [#allocation3], 1 }
 0x2fc   :  { %1072 = vsyncpa [#allocation6], 1 }
 0x2fd   :  { %1073 = vsyncpa [#allocation9], 1 }
 0x2fe   :  { %1074 = vsyncpa [#allocation12], 1 }
 0x2ff   :  { %1075 = vsyncpa [#allocation4], 1 }

</bundles_post_ra>
